<compile_context>
chip_gen: v7x
topology: tpu7x:2x2x1
jax: 0.10.0
libtpu: 0.0.40
codegen_flags: <defaults>
</compile_context>

<pallas_src>
import functools
import math

import jax
import jax.numpy as jnp
from jax import lax
from jax.experimental import pallas as pl
from jax.experimental.pallas import tpu as pltpu


def _leaky_relu(x, slope=0.2):
    return jnp.where(x > 0, x, slope * x)


def _act(acc_f32, bf16_act):
    """LeakyReLU + downcast, ordered per-chip (bf16 VALU on v6e/v7x, f32 on v5e)."""
    if bf16_act:
        h = acc_f32.astype(jnp.bfloat16)
        return _leaky_relu(h)                       # bf16 compare/select/mul
    return _leaky_relu(acc_f32).astype(jnp.bfloat16)  # f32 elementwise, then cast


def _mlp_kernel(x_ref, w1_ref, b1_ref, w2_ref, b2_ref, w3_ref, b3_ref,
                w4_ref, b4_ref, o_ref, *, bf16_act):
    # x_ref: (TB, input_dim) f32 tile; w_i: (out, in) bf16; b_i: (out, 1) f32.
    x = x_ref[...].astype(jnp.bfloat16)             # cast in-kernel (no host pass)

    # Layer 1: contract x's feature axis directly -> (H, TB), batch on lanes.
    dn = (((1,), (1,)), ((), ()))
    acc = lax.dot_general(w1_ref[...], x, dn,
                          preferred_element_type=jnp.float32) + b1_ref[...]
    h = _act(acc, bf16_act)                         # (H, TB) bf16
    # Dropout(p=0.0) == identity -> elided.

    acc = jnp.dot(w2_ref[...], h, preferred_element_type=jnp.float32) + b2_ref[...]
    h = _act(acc, bf16_act)

    acc = jnp.dot(w3_ref[...], h, preferred_element_type=jnp.float32) + b3_ref[...]
    h = _act(acc, bf16_act)

    logits = jnp.dot(w4_ref[...], h, preferred_element_type=jnp.float32) + b4_ref[...]
    o_ref[...] = jax.nn.sigmoid(logits).astype(o_ref.dtype)   # (1, TB) lane-dense


def _round_up(n, m):
    return ((n + m - 1) // m) * m


def _use_bf16_activations():
    # v6e/v7x VALUs are bf16-native; v5e has no bf16 VALU -> keep f32 there.
    try:
        kind = jax.devices()[0].device_kind.lower()
    except Exception:
        return True
    return "v5" not in kind


@functools.partial(jax.jit, static_argnames=("tb",))
def discriminator_really_small(x, params, *, tb=1024):
    """x: (B, input_dim) float32. params: dict from init_params (PyTorch layout).

    Returns sigmoid probabilities of shape (B, 1), float32.
    """
    B, input_dim = x.shape
    w1, b1 = params["w1"], params["b1"]
    w2, b2 = params["w2"], params["b2"]
    w3, b3 = params["w3"], params["b3"]
    w4, b4 = params["w4"], params["b4"]
    bf16_act = _use_bf16_activations()

    # --- Batch tiling: big tiles (step-overhead bound), but >= 2 tiles so the
    # "parallel" grid axis can shard across v7x's two TensorCores.
    b128 = _round_up(B, 128)
    if b128 <= 128:
        tb_eff = 128
    else:
        tb_cap = _round_up(-(-b128 // 2), 128)      # ceil(b128/2) -> 128-multiple
        tb_eff = max(128, min(_round_up(tb, 128), tb_cap))
    b_pad = _round_up(B, tb_eff)
    n_tiles = b_pad // tb_eff

    # Only a cheap zero-pad of the batch rows (no cast/transpose pass on host).
    if b_pad != B:
        x = jnp.pad(x, ((0, b_pad - B), (0, 0)))

    def resident(a):
        # Whole array, same block every grid step -> stays VMEM-resident.
        return pl.BlockSpec(a.shape, lambda i: (0,) * a.ndim)

    kernel = functools.partial(_mlp_kernel, bf16_act=bf16_act)

    out_t = pl.pallas_call(
        kernel,
        out_shape=jax.ShapeDtypeStruct((1, b_pad), jnp.float32),
        grid=(n_tiles,),
        in_specs=[
            pl.BlockSpec((tb_eff, input_dim), lambda i: (i, 0)),   # streamed x tile
            resident(w1), resident(b1),
            resident(w2), resident(b2),
            resident(w3), resident(b3),
            resident(w4), resident(b4),
        ],
        out_specs=pl.BlockSpec((1, tb_eff), lambda i: (0, i)),     # lane-dense store
        compiler_params=pltpu.CompilerParams(
            dimension_semantics=("parallel",)),                    # megacore on v7x
    )(x, w1, b1, w2, b2, w3, b3, w4, b4)

    return out_t.reshape(b_pad, 1)[:B]


def _kaiming_normal(key, out_dim, in_dim):
    # torch.nn.init.kaiming_normal default (a=0): gain=sqrt(2), fan_in mode.
    std = math.sqrt(2.0) / math.sqrt(in_dim)
    w = jax.random.normal(key, (out_dim, in_dim), dtype=jnp.float32) * std
    return w.astype(jnp.bfloat16)   # stored as bf16; f32 accumulation in-kernel


def init_params(key, input_dim, multiplier=None):
    if multiplier is None:
        multiplier = input_dim
    hidden = multiplier * 16
    k1, k2, k3, k4 = jax.random.split(key, 4)
    return {
        "w1": _kaiming_normal(k1, hidden, input_dim),
        "b1": jnp.zeros((hidden, 1), jnp.float32),
        "w2": _kaiming_normal(k2, hidden, hidden),
        "b2": jnp.zeros((hidden, 1), jnp.float32),
        "w3": _kaiming_normal(k3, hidden, hidden),
        "b3": jnp.zeros((hidden, 1), jnp.float32),
        "w4": _kaiming_normal(k4, 1, hidden),
        "b4": jnp.zeros((1, 1), jnp.float32),
    }


def reference_forward(x, params, bf16_act):
    """Pure-JAX reference mirroring the kernel numerics (bf16 operands, f32 acc,
    same LeakyReLU/downcast ordering as the chip-specific kernel path)."""
    hi = jax.lax.Precision.HIGHEST
    f32 = lambda a: a.astype(jnp.float32)

    def act(acc):
        if bf16_act:
            return f32(_leaky_relu(acc.astype(jnp.bfloat16)))
        return f32(_leaky_relu(acc).astype(jnp.bfloat16))

    xt = f32(x.astype(jnp.bfloat16)).T
    h = act(jnp.dot(f32(params["w1"]), xt, precision=hi) + params["b1"])
    h = act(jnp.dot(f32(params["w2"]), h, precision=hi) + params["b2"])
    h = act(jnp.dot(f32(params["w3"]), h, precision=hi) + params["b3"])
    logits = jnp.dot(f32(params["w4"]), h, precision=hi) + params["b4"]
    return jax.nn.sigmoid(logits).T   # (B, 1)


if __name__ == "__main__":
    key = jax.random.PRNGKey(0)
    k_param, k_x = jax.random.split(key)

    input_dim = 8      # -> hidden = 16 * input_dim = 128
    batch = 300        # not a tile multiple -> exercises padding + a 2-tile grid

    params = init_params(k_param, input_dim)
    x = jax.random.normal(k_x, (batch, input_dim), dtype=jnp.float32)

    out = discriminator_really_small(x, params)
    out = jax.block_until_ready(out)

    ref = reference_forward(x, params, _use_bf16_activations())
    assert out.shape == (batch, 1)
    assert bool(jnp.all(jnp.isfinite(out)))
    assert jnp.allclose(out, ref, atol=1e-4, rtol=1e-4), \
        float(jnp.max(jnp.abs(out - ref)))

    print("KERNEL_OK")
</pallas_src>

<mosaic_0001>
module attributes {stable_mosaic.version = 11 : i64} {
  func.func @_mlp_kernel(%arg0: i32, %arg1: memref<256x8xf32, #tpu.memory_space<vmem>>, %arg2: memref<128x8xbf16, #tpu.memory_space<vmem>>, %arg3: memref<128x1xf32, #tpu.memory_space<vmem>>, %arg4: memref<128x128xbf16, #tpu.memory_space<vmem>>, %arg5: memref<128x1xf32, #tpu.memory_space<vmem>>, %arg6: memref<128x128xbf16, #tpu.memory_space<vmem>>, %arg7: memref<128x1xf32, #tpu.memory_space<vmem>>, %arg8: memref<1x128xbf16, #tpu.memory_space<vmem>>, %arg9: memref<1x1xf32, #tpu.memory_space<vmem>>, %arg10: memref<1x256xf32, #tpu.memory_space<vmem>>) attributes {dimension_semantics = [#tpu.dimension_semantics<parallel>], iteration_bounds = array<i64: 2>, scalar_prefetch = 0 : i64, scratch_operands = 0 : i64, tpu.core_type = #tpu.core_type<tc>, window_params = [{transform_indices = @transform_0, window_bounds = array<i64: 256, 8>}, {pipeline_mode = #tpu.pipeline_mode<synchronous>, transform_indices = @transform_1, window_bounds = array<i64: 128, 8>}, {pipeline_mode = #tpu.pipeline_mode<synchronous>, transform_indices = @transform_2, window_bounds = array<i64: 128, 1>}, {pipeline_mode = #tpu.pipeline_mode<synchronous>, transform_indices = @transform_3, window_bounds = array<i64: 128, 128>}, {pipeline_mode = #tpu.pipeline_mode<synchronous>, transform_indices = @transform_4, window_bounds = array<i64: 128, 1>}, {pipeline_mode = #tpu.pipeline_mode<synchronous>, transform_indices = @transform_5, window_bounds = array<i64: 128, 128>}, {pipeline_mode = #tpu.pipeline_mode<synchronous>, transform_indices = @transform_6, window_bounds = array<i64: 128, 1>}, {pipeline_mode = #tpu.pipeline_mode<synchronous>, transform_indices = @transform_7, window_bounds = array<i64: 1, 128>}, {pipeline_mode = #tpu.pipeline_mode<synchronous>, transform_indices = @transform_8, window_bounds = array<i64: 1, 1>}, {transform_indices = @transform_9, window_bounds = array<i64: 1, 256>}]} {
    %c0 = arith.constant 0 : index
    %c0_0 = arith.constant 0 : index
    %0 = vector.load %arg1[%c0, %c0_0] : memref<256x8xf32, #tpu.memory_space<vmem>>, vector<256x8xf32>
    %1 = arith.truncf %0 : vector<256x8xf32> to vector<256x8xbf16>
    %c0_1 = arith.constant 0 : index
    %c0_2 = arith.constant 0 : index
    %2 = vector.load %arg2[%c0_1, %c0_2] : memref<128x8xbf16, #tpu.memory_space<vmem>>, vector<128x8xbf16>
    %cst = arith.constant dense<0.000000e+00> : vector<128x256xf32>
    %3 = tpu.matmul %2, %1, %cst {dimension_numbers = #tpu.dot_dimension_numbers<[1], [1], [0], [0], [0, 0, 1, 0], [], []>} : vector<128x8xbf16>, vector<256x8xbf16>, vector<128x256xf32> -> vector<128x256xf32>
    %c0_3 = arith.constant 0 : index
    %c0_4 = arith.constant 0 : index
    %4 = vector.load %arg3[%c0_3, %c0_4] : memref<128x1xf32, #tpu.memory_space<vmem>>, vector<128x1xf32>
    %5 = vector.broadcast %4 : vector<128x1xf32> to vector<128x256xf32>
    %6 = arith.addf %3, %5 : vector<128x256xf32>
    %7 = arith.truncf %6 : vector<128x256xf32> to vector<128x256xbf16>
    %cst_5 = arith.constant 0.000000e+00 : bf16
    %8 = vector.broadcast %cst_5 : bf16 to vector<128x256xbf16>
    %9 = arith.cmpf ogt, %7, %8 : vector<128x256xbf16>
    %cst_6 = arith.constant 2.001950e-01 : bf16
    %10 = vector.broadcast %cst_6 : bf16 to vector<128x256xbf16>
    %11 = arith.mulf %10, %7 : vector<128x256xbf16>
    %12 = arith.select %9, %7, %11 : vector<128x256xi1>, vector<128x256xbf16>
    %c0_7 = arith.constant 0 : index
    %c0_8 = arith.constant 0 : index
    %13 = vector.load %arg4[%c0_7, %c0_8] : memref<128x128xbf16, #tpu.memory_space<vmem>>, vector<128x128xbf16>
    %cst_9 = arith.constant dense<0.000000e+00> : vector<128x256xf32>
    %14 = tpu.matmul %13, %12, %cst_9 {dimension_numbers = #tpu.dot_dimension_numbers<[1], [0], [0], [1], [0, 0, 1, 1], [], []>} : vector<128x128xbf16>, vector<128x256xbf16>, vector<128x256xf32> -> vector<128x256xf32>
    %c0_10 = arith.constant 0 : index
    %c0_11 = arith.constant 0 : index
    %15 = vector.load %arg5[%c0_10, %c0_11] : memref<128x1xf32, #tpu.memory_space<vmem>>, vector<128x1xf32>
    %16 = vector.broadcast %15 : vector<128x1xf32> to vector<128x256xf32>
    %17 = arith.addf %14, %16 : vector<128x256xf32>
    %18 = arith.truncf %17 : vector<128x256xf32> to vector<128x256xbf16>
    %cst_12 = arith.constant 0.000000e+00 : bf16
    %19 = vector.broadcast %cst_12 : bf16 to vector<128x256xbf16>
    %20 = arith.cmpf ogt, %18, %19 : vector<128x256xbf16>
    %cst_13 = arith.constant 2.001950e-01 : bf16
    %21 = vector.broadcast %cst_13 : bf16 to vector<128x256xbf16>
    %22 = arith.mulf %21, %18 : vector<128x256xbf16>
    %23 = arith.select %20, %18, %22 : vector<128x256xi1>, vector<128x256xbf16>
    %c0_14 = arith.constant 0 : index
    %c0_15 = arith.constant 0 : index
    %24 = vector.load %arg6[%c0_14, %c0_15] : memref<128x128xbf16, #tpu.memory_space<vmem>>, vector<128x128xbf16>
    %cst_16 = arith.constant dense<0.000000e+00> : vector<128x256xf32>
    %25 = tpu.matmul %24, %23, %cst_16 {dimension_numbers = #tpu.dot_dimension_numbers<[1], [0], [0], [1], [0, 0, 1, 1], [], []>} : vector<128x128xbf16>, vector<128x256xbf16>, vector<128x256xf32> -> vector<128x256xf32>
    %c0_17 = arith.constant 0 : index
    %c0_18 = arith.constant 0 : index
    %26 = vector.load %arg7[%c0_17, %c0_18] : memref<128x1xf32, #tpu.memory_space<vmem>>, vector<128x1xf32>
    %27 = vector.broadcast %26 : vector<128x1xf32> to vector<128x256xf32>
    %28 = arith.addf %25, %27 : vector<128x256xf32>
    %29 = arith.truncf %28 : vector<128x256xf32> to vector<128x256xbf16>
    %cst_19 = arith.constant 0.000000e+00 : bf16
    %30 = vector.broadcast %cst_19 : bf16 to vector<128x256xbf16>
    %31 = arith.cmpf ogt, %29, %30 : vector<128x256xbf16>
    %cst_20 = arith.constant 2.001950e-01 : bf16
    %32 = vector.broadcast %cst_20 : bf16 to vector<128x256xbf16>
    %33 = arith.mulf %32, %29 : vector<128x256xbf16>
    %34 = arith.select %31, %29, %33 : vector<128x256xi1>, vector<128x256xbf16>
    %c0_21 = arith.constant 0 : index
    %c0_22 = arith.constant 0 : index
    %35 = vector.load %arg8[%c0_21, %c0_22] : memref<1x128xbf16, #tpu.memory_space<vmem>>, vector<1x128xbf16>
    %cst_23 = arith.constant dense<0.000000e+00> : vector<1x256xf32>
    %36 = tpu.matmul %35, %34, %cst_23 {dimension_numbers = #tpu.dot_dimension_numbers<[1], [0], [0], [1], [0, 0, 1, 1], [], []>} : vector<1x128xbf16>, vector<128x256xbf16>, vector<1x256xf32> -> vector<1x256xf32>
    %c0_24 = arith.constant 0 : index
    %c0_25 = arith.constant 0 : index
    %37 = vector.load %arg9[%c0_24, %c0_25] : memref<1x1xf32, #tpu.memory_space<vmem>>, vector<1x1xf32>
    %38 = vector.broadcast %37 : vector<1x1xf32> to vector<1x256xf32>
    %39 = arith.addf %36, %38 : vector<1x256xf32>
    %40 = arith.negf %39 : vector<1x256xf32>
    %41 = math.exp %40 : vector<1x256xf32>
    %cst_26 = arith.constant 1.000000e+00 : f32
    %42 = vector.broadcast %cst_26 : f32 to vector<1x256xf32>
    %43 = arith.addf %42, %41 : vector<1x256xf32>
    %44 = arith.divf %42, %43 : vector<1x256xf32>
    %c0_27 = arith.constant 0 : index
    %c0_28 = arith.constant 0 : index
    %45 = vector.load %arg10[%c0_27, %c0_28] : memref<1x256xf32, #tpu.memory_space<vmem>>, vector<1x256xf32>
    tpu.vector_store %arg10[%c0_27, %c0_28], %44 {strides = array<i32>} : memref<1x256xf32, #tpu.memory_space<vmem>>, vector<1x256xf32>,
    return
  }
  func.func @transform_0(%arg0: i32) -> (i32, i32) {
    %c0_i32 = arith.constant 0 : i32
    %c0_i32_0 = arith.constant 0 : i32
    return %arg0, %c0_i32 : i32, i32
  }
  func.func @transform_1(%arg0: i32) -> (i32, i32) {
    %c0_i32 = arith.constant 0 : i32
    %c0_i32_0 = arith.constant 0 : i32
    %c0_i32_1 = arith.constant 0 : i32
    return %c0_i32, %c0_i32_0 : i32, i32
  }
  func.func @transform_2(%arg0: i32) -> (i32, i32) {
    %c0_i32 = arith.constant 0 : i32
    %c0_i32_0 = arith.constant 0 : i32
    %c0_i32_1 = arith.constant 0 : i32
    return %c0_i32, %c0_i32_0 : i32, i32
  }
  func.func @transform_3(%arg0: i32) -> (i32, i32) {
    %c0_i32 = arith.constant 0 : i32
    %c0_i32_0 = arith.constant 0 : i32
    %c0_i32_1 = arith.constant 0 : i32
    return %c0_i32, %c0_i32_0 : i32, i32
  }
  func.func @transform_4(%arg0: i32) -> (i32, i32) {
    %c0_i32 = arith.constant 0 : i32
    %c0_i32_0 = arith.constant 0 : i32
    %c0_i32_1 = arith.constant 0 : i32
    return %c0_i32, %c0_i32_0 : i32, i32
  }
  func.func @transform_5(%arg0: i32) -> (i32, i32) {
    %c0_i32 = arith.constant 0 : i32
    %c0_i32_0 = arith.constant 0 : i32
    %c0_i32_1 = arith.constant 0 : i32
    return %c0_i32, %c0_i32_0 : i32, i32
  }
  func.func @transform_6(%arg0: i32) -> (i32, i32) {
    %c0_i32 = arith.constant 0 : i32
    %c0_i32_0 = arith.constant 0 : i32
    %c0_i32_1 = arith.constant 0 : i32
    return %c0_i32, %c0_i32_0 : i32, i32
  }
  func.func @transform_7(%arg0: i32) -> (i32, i32) {
    %c0_i32 = arith.constant 0 : i32
    %c0_i32_0 = arith.constant 0 : i32
    %c0_i32_1 = arith.constant 0 : i32
    return %c0_i32, %c0_i32_0 : i32, i32
  }
  func.func @transform_8(%arg0: i32) -> (i32, i32) {
    %c0_i32 = arith.constant 0 : i32
    %c0_i32_0 = arith.constant 0 : i32
    %c0_i32_1 = arith.constant 0 : i32
    return %c0_i32, %c0_i32_0 : i32, i32
  }
  func.func @transform_9(%arg0: i32) -> (i32, i32) {
    %c0_i32 = arith.constant 0 : i32
    %c0_i32_0 = arith.constant 0 : i32
    return %c0_i32, %arg0 : i32, i32
  }
}

</mosaic_0001>

<bundles_post_ra>
// kernel: discriminator_really_small.1
= control target key start
LH: loop header
LB: loop body
LE: loop exit
PB: predicated region body
PF: predicated region fallthrough
CT: control target
= control target key end

     0   :  { %s1790_s11 = smov 0   ;;  %s2119_s0 = inlined_call_operand.vmem [shape: f32[512,8], index: 0, kind: input, shape index: {}]   ;;  %s2120_s1 = inlined_call_operand.vmem [shape: bf16[128,8], index: 1, kind: input, shape index: {}]   ;;  %s2121_s2 = inlined_call_operand.vmem [shape: f32[128,1], index: 2, kind: input, shape index: {}]   ;;  %s2122_s3 = inlined_call_operand.vmem [shape: bf16[128,128], index: 3, kind: input, shape index: {}]   ;;  %s2123_s4 = inlined_call_operand.vmem [shape: f32[128,1], index: 4, kind: input, shape index: {}]   ;;  %s2124_s5 = inlined_call_operand.vmem [shape: bf16[128,128], index: 5, kind: input, shape index: {}]   ;;  %s2125_s6 = inlined_call_operand.vmem [shape: f32[128,1], index: 6, kind: input, shape index: {}]   ;;  %s2126_s7 = inlined_call_operand.vmem [shape: bf16[1,128], index: 7, kind: input, shape index: {}]   ;;  %s2127_s8 = inlined_call_operand.<no memory space> [shape: f32[1,1], index: 8, kind: input, shape index: {}]   ;;  %s2128_s9 = inlined_call_operand.vmem [shape: f32[1,512], index: 9, kind: output, shape index: {}]  }
   0x1   :  { %v14_v0 = vstv %s2127_s8 }
   0x2   :  { %15 = vst [vmem:[#allocation2] sm:$0x1] %v14_v0 }
   0x3 LB: > { %s1599_s12 = sadd.s32 4294967295, %s1733_s11   ;;  %p1603_p0 = scmp.ge.s32.totalorder %s1733_s11, 1  ;;  %s1733_s11 = sphi %s1790_s11, %s21_s11  }
   0x4   : > { %p290_p1 = scmp.lt.s32.totalorder %s1733_s11, 3 }
   0x6   : > { %p291_p2 = pnand %p1603_p0, %p290_p1 }
   0x7   : > { %s1604_s13 = sshll.u32 (!%p291_p2), %s1599_s12, 5  ;;  %v1803_v1 = vld [vmem:[%s2120_s1] sm:$0xff] (!%p291_p2)   ;;  %vm538_vm0 = vcmask (!%p291_p2), 64512   ;;  %v1735_v3 = vmov (!%p291_p2), 0   ;;  %v404_v4 = vld [vmem:[%s2121_s2 + $0x10] sm:$0xff] (!%p291_p2)  ;;  %v403_v5 = vld [vmem:[%s2121_s2 + $0x8] sm:$0xff] (!%p291_p2) }
   0x8   : > { %294 = sbr.rel (%p291_p2) target bundleno = 1180 (0x49c), region = 56  ;;  %p326_p3 = scmp.lt.s32.totalorder (!%p291_p2), %s1604_s13, 63  ;;  %v402_v2 = vld [vmem:[%s2121_s2] sm:$0xff] (!%p291_p2)  ;;  %1659 = vmatprep.mubr.msk.bf16.mxu0 (!%p291_p2), %vm538_vm0, %v1803_v1  ;;  %1693 = vset.pattern.permute.xlu0 (!%p291_p2), %v1735_v3  ;;  %v405_v6 = vld [vmem:[%s2121_s2 + $0x18] sm:$0xff] (!%p291_p2)  ;;  %v407_v19 = vld [vmem:[%s2121_s2 + $0x28] sm:$0xff] (!%p291_p2) }
   0x9   : > { %420 = vperm.xlu0 (!%p291_p2), %1693, %v402_v2   ;;  %1694 = vset.pattern.permute.xlu1 (!%p291_p2), %v1735_v3  ;;  %v406_v16 = vld [vmem:[%s2121_s2 + $0x20] sm:$0xff] (!%p291_p2)  ;;  %v408_v22 = vld [vmem:[%s2121_s2 + $0x30] sm:$0xff] (!%p291_p2)  ;;  %v409_v30 = vld [vmem:[%s2121_s2 + $0x38] sm:$0xff] (!%p291_p2) }
   0xa   : > { %430 = vperm.xlu1 (!%p291_p2), %1694, %v404_v4   ;;  %980 = vmatprep.mubr.bf16.mxu1 (!%p291_p2), %v1735_v3  ;;  %v410_v28 = vld [vmem:[%s2121_s2 + $0x40] sm:$0xff] (!%p291_p2)  ;;  %v411_v31 = vld [vmem:[%s2121_s2 + $0x48] sm:$0xff] (!%p291_p2)  ;;  %v412_v34 = vld [vmem:[%s2121_s2 + $0x50] sm:$0xff] (!%p291_p2) }
   0xb   : > { %v413_v36 = vld [vmem:[%s2121_s2 + $0x58] sm:$0xff] (!%p291_p2)  ;;  %v414_v39 = vld [vmem:[%s2121_s2 + $0x60] sm:$0xff] (!%p291_p2)  ;;  %v415_v44 = vld [vmem:[%s2121_s2 + $0x68] sm:$0xff] (!%p291_p2) }
   0xc   : > { %v416_v46 = vld [vmem:[%s2121_s2 + $0x70] sm:$0xff] (!%p291_p2)  ;;  %v417_v50 = vld [vmem:[%s2121_s2 + $0x78] sm:$0xff] (!%p291_p2)  ;;  %v804_v53 = vld [vmem:[%s2123_s4] sm:$0xff] (!%p291_p2) }
   0xd   : > { %425 = vperm.xlu0 (!%p291_p2), %1693, %v403_v5   ;;  %v806_v55 = vld [vmem:[%s2123_s4 + $0x10] sm:$0xff] (!%p291_p2)  ;;  %v805_v56 = vld [vmem:[%s2123_s4 + $0x8] sm:$0xff] (!%p291_p2)  ;;  %v807_v59 = vld [vmem:[%s2123_s4 + $0x18] sm:$0xff] (!%p291_p2) }
   0xe   : > { %435 = vperm.xlu1 (!%p291_p2), %1694, %v405_v6   ;;  %v808_v60 = vld [vmem:[%s2123_s4 + $0x20] sm:$0xff] (!%p291_p2)  ;;  %v809_v0 = vld [vmem:[%s2123_s4 + $0x28] sm:$0xff] (!%p291_p2)  ;;  %v810_v2 = vld [vmem:[%s2123_s4 + $0x30] sm:$0xff] (!%p291_p2) }
   0xf   : > { %s2130_s13 = smov (!%p326_p3, %s1604_s13), 63 }
  0x10   : > { %s1605_s19 = sshll.u32 %s2130_s13, 3 }
  0x11   : > { %s1822_s24 = scalar_lea.vmem %s2119_s0, %s1605_s19  ;;  %440 = vperm.xlu0 %1693, %v406_v16  }
  0x12   : > { %v354_v7 = vld [vmem:[%s1822_s24 + $0x80] sm:$0xff]  ;;  %v355_v8 = vld [vmem:[%s1822_s24 + $0x88] sm:$0xff]  ;;  %v356_v12 = vld [vmem:[%s1822_s24 + $0x90] sm:$0xff]  ;;  %445 = vperm.xlu1 %1694, %v407_v19  }
  0x13   : > { %v338_v9 = vld [vmem:[%s1822_s24] sm:$0xff]  ;;  %v378_v10 = vpack.c.bf16 %v355_v8, %v354_v7  ;;  %v339_v11 = vld [vmem:[%s1822_s24 + $0x8] sm:$0xff]  ;;  %v357_v13 = vld [vmem:[%s1822_s24 + $0x98] sm:$0xff] }
  0x14   : > { %v370_v14 = vpack.c.bf16 %v339_v11, %v338_v9  ;;  %v379_v15 = vpack.c.bf16 %v357_v13, %v356_v12  ;;  %v340_v17 = vld [vmem:[%s1822_s24 + $0x10] sm:$0xff]  ;;  %v341_v18 = vld [vmem:[%s1822_s24 + $0x18] sm:$0xff]  ;;  %v358_v23 = vld [vmem:[%s1822_s24 + $0xa0] sm:$0xff] }
  0x15   : > { %1675 = vmatprep.subr.msk.bf16.mxu0 %vm538_vm0, %v378_v10  ;;  %v371_v21 = vpack.c.bf16 %v341_v18, %v340_v17  ;;  %v359_v24 = vld [vmem:[%s1822_s24 + $0xa8] sm:$0xff]  ;;  %450 = vperm.xlu0 %1693, %v408_v22   ;;  %v342_v27 = vld [vmem:[%s1822_s24 + $0x20] sm:$0xff]  ;;  %v360_v33 = vld [vmem:[%s1822_s24 + $0xb0] sm:$0xff] }
  0x16   : > { %v564_v20 = vsel %vm538_vm0, %v370_v14, 0  ;;  %v380_v26 = vpack.c.bf16 %v359_v24, %v358_v23  ;;  %v343_v29 = vld [vmem:[%s1822_s24 + $0x28] sm:$0xff]  ;;  %455 = vperm.xlu1 %1694, %v409_v30   ;;  %v361_v35 = vld [vmem:[%s1822_s24 + $0xb8] sm:$0xff]  ;;  %v344_v40 = vld [vmem:[%s1822_s24 + $0x30] sm:$0xff] }
  0x17   : > { %1644 = vmatpush3.bf16.xpose.msra.mxu0 %v564_v20  ;;  %v567_v25 = vsel %vm538_vm0, %v371_v21, 0  ;;  %v372_v32 = vpack.c.bf16 %v343_v29, %v342_v27  ;;  %v381_v38 = vpack.c.bf16 %v361_v35, %v360_v33  ;;  %v345_v41 = vld [vmem:[%s1822_s24 + $0x38] sm:$0xff]  ;;  %v346_v42 = vld [vmem:[%s1822_s24 + $0x40] sm:$0xff]  ;;  %v347_v43 = vld [vmem:[%s1822_s24 + $0x48] sm:$0xff] }
  0x18   : > { %1676 = vmatprep.subr.msk.bf16.mxu0 %vm538_vm0, %v379_v15  ;;  %v373_v45 = vpack.c.bf16 %v345_v41, %v344_v40  ;;  %v362_v47 = vld [vmem:[%s1822_s24 + $0xc0] sm:$0xff]  ;;  %v363_v48 = vld [vmem:[%s1822_s24 + $0xc8] sm:$0xff]  ;;  %v374_v49 = vpack.c.bf16 %v347_v43, %v346_v42  ;;  %v364_v57 = vld [vmem:[%s1822_s24 + $0xd0] sm:$0xff] }
  0x19   : > { %460 = vperm.xlu0 %1693, %v410_v28   ;;  %v570_v37 = vsel %vm538_vm0, %v372_v32, 0  ;;  %v382_v52 = vpack.c.bf16 %v363_v48, %v362_v47  ;;  %v365_v58 = vld [vmem:[%s1822_s24 + $0xd8] sm:$0xff]  ;;  %v348_v61 = vld [vmem:[%s1822_s24 + $0x50] sm:$0xff]  ;;  %v366_v5 = vld [vmem:[%s1822_s24 + $0xe0] sm:$0xff] }
  0x1a   : > { %465 = vperm.xlu1 %1694, %v411_v31   ;;  %v573_v51 = vsel %vm538_vm0, %v373_v45, 0  ;;  %v576_v54 = vsel %vm538_vm0, %v374_v49, 0  ;;  %v349_v62 = vld [vmem:[%s1822_s24 + $0x58] sm:$0xff]  ;;  %v383_v63 = vpack.c.bf16 %v365_v58, %v364_v57  ;;  %v367_v6 = vld [vmem:[%s1822_s24 + $0xe8] sm:$0xff]  ;;  %v812_v10 = vld [vmem:[%s2123_s4 + $0x40] sm:$0xff] }
  0x1b   : > { %v375_v4 = vpack.c.bf16 %v349_v62, %v348_v61  ;;  %v811_v7 = vld [vmem:[%s2123_s4 + $0x38] sm:$0xff]  ;;  %v384_v9 = vpack.c.bf16 %v367_v6, %v366_v5  ;;  %v350_v11 = vld [vmem:[%s1822_s24 + $0x60] sm:$0xff]  ;;  %v351_v12 = vld [vmem:[%s1822_s24 + $0x68] sm:$0xff] }
  0x1c   : > { %v813_v13 = vld [vmem:[%s2123_s4 + $0x48] sm:$0xff]  ;;  %v376_v14 = vpack.c.bf16 %v351_v12, %v350_v11  ;;  %v814_v15 = vld [vmem:[%s2123_s4 + $0x50] sm:$0xff]  ;;  %v369_v17 = vld [vmem:[%s1822_s24 + $0xf8] sm:$0xff] }
  0x1d   : > { %470 = vperm.xlu0 %1693, %v412_v34   ;;  %v579_v8 = vsel %vm538_vm0, %v375_v4, 0  ;;  %v368_v16 = vld [vmem:[%s1822_s24 + $0xf0] sm:$0xff]  ;;  %v815_v18 = vld [vmem:[%s2123_s4 + $0x58] sm:$0xff]  ;;  %v816_v21 = vld [vmem:[%s2123_s4 + $0x60] sm:$0xff] }
  0x1e   : > { %475 = vperm.xlu1 %1694, %v413_v36   ;;  %v582_v19 = vsel %vm538_vm0, %v376_v14, 0  ;;  %v385_v20 = vpack.c.bf16 %v369_v17, %v368_v16  ;;  %v352_v22 = vld [vmem:[%s1822_s24 + $0x70] sm:$0xff]  ;;  %v353_v23 = vld [vmem:[%s1822_s24 + $0x78] sm:$0xff]  ;;  %v817_v24 = vld [vmem:[%s2123_s4 + $0x68] sm:$0xff]  ;;  %s1606_s24 = sshll.u32 %s1599_s12, 1 }
  0x1f   : > { %1646 = vmatpush3.bf16.xpose.msra.mxu0 %v567_v25  ;;  %v377_v25 = vpack.c.bf16 %v353_v23, %v352_v22  ;;  %v819_v27 = vld [vmem:[%s2123_s4 + $0x78] sm:$0xff]  ;;  %v1141_v29 = vld [vmem:[%s2125_s6] sm:$0xff]  ;;  %v1142_v30 = vld [vmem:[%s2125_s6 + $0x8] sm:$0xff]  ;;  %p332_p4 = scmp.lt.s32.totalorder %s1606_s24, 3 }
  0x20   : > { %1677 = vmatprep.subr.msk.bf16.mxu0 %vm538_vm0, %v380_v26  ;;  %v818_v26 = vld [vmem:[%s2123_s4 + $0x70] sm:$0xff]  ;;  %v1696_v32 = vld [vmem:[%s2120_s1 + $0x8] sm:$0xff]   ;;  %v1144_v33 = vld [vmem:[%s2125_s6 + $0x18] sm:$0xff] }
  0x21   : > { %480 = vperm.xlu0 %1693, %v414_v39   ;;  %v585_v28 = vsel %vm538_vm0, %v377_v25, 0  ;;  %v1143_v31 = vld [vmem:[%s2125_s6 + $0x10] sm:$0xff]  ;;  %v1145_v34 = vld [vmem:[%s2125_s6 + $0x20] sm:$0xff]  ;;  %v1146_v35 = vld [vmem:[%s2125_s6 + $0x28] sm:$0xff]  ;;  %s2132_s24 = smov (!%p332_p4, %s1606_s24), 3 }
  0x22   : > { %485 = vperm.xlu1 %1694, %v415_v44   ;;  %v1147_v36 = vld [vmem:[%s2125_s6 + $0x30] sm:$0xff]  ;;  %v1150_v39 = vld [vmem:[%s2125_s6 + $0x48] sm:$0xff]  ;;  %v1698_v41 = vld [vmem:[%s2120_s1 + $0x18] sm:$0xff]   ;;  %s334_s28 = scalar_lea.vmem %s2128_s9, %s2132_s24 }
  0x23   : > { %v1151_v40 = vld [vmem:[%s2125_s6 + $0x50] sm:$0xff]  ;;  %v1152_v42 = vld [vmem:[%s2125_s6 + $0x58] sm:$0xff]  ;;  %v1153_v43 = vld [vmem:[%s2125_s6 + $0x60] sm:$0xff] }
  0x24   : > { %v1154_v44 = vld [vmem:[%s2125_s6 + $0x68] sm:$0xff]  ;;  %v1155_v45 = vld [vmem:[%s2125_s6 + $0x70] sm:$0xff]  ;;  %v1156_v47 = vld [vmem:[%s2125_s6 + $0x78] sm:$0xff] }
  0x25   : > { %490 = vperm.xlu0 %1693, %v416_v46   ;;  %v1699_v46 = vld [vmem:[%s2120_s1 + $0x20] sm:$0xff]   ;;  %v1700_v49 = vld [vmem:[%s2120_s1 + $0x28] sm:$0xff]  }
  0x26   : > { %495 = vperm.xlu1 %1694, %v417_v50   ;;  %v1463_v48 = vld [vmem:[#allocation2] sm:$0x1]  ;;  %v1701_v50 = vld [vmem:[%s2120_s1 + $0x30] sm:$0xff]  }
  0x27   : > { %1648 = vmatpush3.bf16.xpose.msra.mxu0 %v570_v37  ;;  %v1697_v37 = vld [vmem:[%s2120_s1 + $0x10] sm:$0xff]  }
  0x28   : > { %1678 = vmatprep.subr.msk.bf16.mxu0 %vm538_vm0, %v381_v38  ;;  %v1149_v38 = vld [vmem:[%s2125_s6 + $0x40] sm:$0xff] }
  0x29   : > { %822 = vperm.xlu0 %1693, %v804_v53  }
  0x2a   : > { %827 = vperm.xlu1 %1694, %v805_v56  }
  0x2d   : > { %832 = vperm.xlu0 %1693, %v806_v55  }
  0x2e   : > { %837 = vperm.xlu1 %1694, %v807_v59  }
  0x2f   : > { %1650 = vmatpush3.bf16.xpose.msra.mxu0 %v573_v51  ;;  %v1702_v51 = vld [vmem:[%s2120_s1 + $0x38] sm:$0xff]  }
  0x30   : > { %1679 = vmatprep.subr.msk.bf16.mxu0 %vm538_vm0, %v382_v52 }
  0x31   : > { %842 = vperm.xlu0 %1693, %v808_v60  }
  0x32   : > { %847 = vperm.xlu1 %1694, %v809_v0  }
  0x35   : > { %852 = vperm.xlu0 %1693, %v810_v2  }
  0x36   : > { %857 = vperm.xlu1 %1694, %v811_v7  }
  0x37   : > { %1652 = vmatpush3.bf16.xpose.msra.mxu0 %v576_v54 }
  0x38   : > { %1680 = vmatprep.subr.msk.bf16.mxu0 %vm538_vm0, %v383_v63 }
  0x39   : > { %862 = vperm.xlu0 %1693, %v812_v10  }
  0x3a   : > { %867 = vperm.xlu1 %1694, %v813_v13  }
  0x3d   : > { %872 = vperm.xlu0 %1693, %v814_v15  }
  0x3e   : > { %877 = vperm.xlu1 %1694, %v815_v18  }
  0x3f   : > { %1654 = vmatpush3.bf16.xpose.msra.mxu0 %v579_v8 }
  0x40   : > { %1681 = vmatprep.subr.msk.bf16.mxu0 %vm538_vm0, %v384_v9 }
  0x41   : > { %882 = vperm.xlu0 %1693, %v816_v21  }
  0x42   : > { %887 = vperm.xlu1 %1694, %v817_v24  }
  0x45   : > { %892 = vperm.xlu0 %1693, %v818_v26  }
  0x46   : > { %897 = vperm.xlu1 %1694, %v819_v27  }
  0x47   : > { %1656 = vmatpush3.bf16.xpose.msra.mxu0 %v582_v19 }
  0x48   : > { %1682 = vmatprep.subr.msk.bf16.mxu0 %vm538_vm0, %v385_v20 }
  0x49   : > { %1159 = vperm.xlu0 %1693, %v1141_v29  }
  0x4a   : > { %1164 = vperm.xlu1 %1694, %v1142_v30  }
  0x4d   : > { %1169 = vperm.xlu0 %1693, %v1143_v31  }
  0x4e   : > { %1174 = vperm.xlu1 %1694, %v1144_v33  }
  0x4f   : > { %1658 = vmatpush3.bf16.xpose.msra.mxu0 %v585_v28 }
  0x51   : > { %1179 = vperm.xlu0 %1693, %v1145_v34  }
  0x52   : > { %1184 = vperm.xlu1 %1694, %v1146_v35  }
  0x55   : > { %1189 = vperm.xlu0 %1693, %v1147_v36  }
  0x56   : > { %1660 = vmatmul.mubr.msk.bf16.vlgmr.msra.gmra.mrb[0].mxu0 %vm538_vm0, %v1803_v1  ;;  %v1148_v1 = vld [vmem:[%s2125_s6 + $0x38] sm:$0xff] }
  0x57   : > { %1661 = vmatprep.mubr.msk.bf16.mxu0 %vm538_vm0, %v1696_v32  ;;  %1194 = vperm.xlu1 %1694, %v1148_v1  }
  0x59   : > { %1199 = vperm.xlu0 %1693, %v1149_v38  }
  0x5b   : > { %1204 = vperm.xlu1 %1694, %v1150_v39  }
  0x5d   : > { %1209 = vperm.xlu0 %1693, %v1151_v40  }
  0x5e   : > { %1662 = vmatmul.mubr.msk.bf16.gmra.mrb[4].mxu0 %vm538_vm0, %v1696_v32 }
  0x5f   : > { %1663 = vmatprep.mubr.msk.bf16.mxu0 %vm538_vm0, %v1697_v37  ;;  %1214 = vperm.xlu1 %1694, %v1152_v42  }
  0x61   : > { %1219 = vperm.xlu0 %1693, %v1153_v43  }
  0x63   : > { %1224 = vperm.xlu1 %1694, %v1154_v44  }
  0x65   : > { %1229 = vperm.xlu0 %1693, %v1155_v45  }
  0x66   : > { %1664 = vmatmul.mubr.msk.bf16.gmra.mrb[8].mxu0 %vm538_vm0, %v1697_v37 }
  0x67   : > { %1665 = vmatprep.mubr.msk.bf16.mxu0 %vm538_vm0, %v1698_v41  ;;  %1234 = vperm.xlu1 %1694, %v1156_v47  }
  0x69   : > { %1466 = vperm.xlu0 %1693, %v1463_v48  }
  0x6e   : > { %1666 = vmatmul.mubr.msk.bf16.gmra.mrb[12].mxu0 %vm538_vm0, %v1698_v41 }
  0x6f   : > { %1667 = vmatprep.mubr.msk.bf16.mxu0 %vm538_vm0, %v1699_v46 }
  0x76   : > { %1668 = vmatmul.mubr.msk.bf16.gmra.mrb[16].mxu0 %vm538_vm0, %v1699_v46 }
  0x77   : > { %1669 = vmatprep.mubr.msk.bf16.mxu0 %vm538_vm0, %v1700_v49 }
  0x7e   : > { %1670 = vmatmul.mubr.msk.bf16.gmra.mrb[20].mxu0 %vm538_vm0, %v1700_v49 }
  0x7f   : > { %1671 = vmatprep.mubr.msk.bf16.mxu0 %vm538_vm0, %v1701_v50 }
  0x86   : > { %1672 = vmatmul.mubr.msk.bf16.gmra.mrb[24].mxu0 %vm538_vm0, %v1701_v50 }
  0x87   : > { %1673 = vmatprep.mubr.msk.bf16.mxu0 %vm538_vm0, %v1702_v51 }
  0x88   : > { %v421_v52 = vpop.permute.xlu0 %420 }
  0x89   : > { %v431_v60 = vpop.permute.xlu1 %430 }
  0x8c   : > { %v426_v55 = vpop.permute.xlu0 %425 }
  0x8d   : > { %v436_v7 = vpop.permute.xlu1 %435 }
  0x8e   : > { %1674 = vmatmul.mubr.msk.bf16.gmra.mrb[28].mxu0 %vm538_vm0, %v1702_v51 }
  0x8f   : > { %1505 = vmatprep.mubr.bf16.mxu0 %v1735_v3 }
  0x90   : > { %v441_v21 = vpop.permute.xlu0 %440 }
  0x91   : > { %v446_v23 = vpop.permute.xlu1 %445 }
  0x94   : > { %v451_v37 = vpop.permute.xlu0 %450 }
  0x95   : > { %v456_v38 = vpop.permute.xlu1 %455 }
 0x129   : > { %v645_v53 = vpop.f32.mrb[0].mxu0 }
 0x12a   : > { %v647_v54 = vpop.f32.mrb[1].mxu0  ;;  %v646_v57 = vadd.f32 %v645_v53, %v421_v52 }
 0x12b   : > { %v649_v56 = vpop.f32.mrb[2].mxu0  ;;  %v648_v61 = vadd.f32 %v647_v54, %v421_v52  ;;  %v461_v52 = vpop.permute.xlu0 %460 }
 0x12c   : > { %v650_v58 = vadd.f32 %v649_v56, %v426_v55  ;;  %v651_v59 = vpop.f32.mrb[3].mxu0  ;;  %v466_v54 = vpop.permute.xlu1 %465 }
 0x12d   : > { %v652_v62 = vadd.f32 %v651_v59, %v426_v55 }
 0x12e   : > { %v724_v63 = vpack.c.bf16 %v650_v58, %v646_v57 }
 0x12f   : > { %v725_v0 = vpack.c.bf16 %v652_v62, %v648_v61 }
 0x130   : > { %v756_v2 = vmul.bf16 1045249613, %v724_v63  ;;  %vm740_vm2 = vcmp.gt.bf16.partialorder %v724_v63, 0 }
 0x131   : > { %v655_v4 = vpop.f32.mrb[4].mxu0  ;;  %vm741_vm1 = vcmp.gt.bf16.partialorder %v725_v0, 0  ;;  %v757_v5 = vmul.bf16 1045249613, %v725_v0 }
 0x132   : > { %v657_v6 = vpop.f32.mrb[5].mxu0  ;;  %v656_v10 = vadd.f32 %v655_v4, %v431_v60  ;;  %v772_v13 = vsel %vm740_vm2, %v724_v63, %v756_v2 }
 0x133   : > { %v659_v8 = vpop.f32.mrb[6].mxu0  ;;  %v773_v9 = vsel %vm741_vm1, %v725_v0, %v757_v5  ;;  %v658_v14 = vadd.f32 %v657_v6, %v431_v60  ;;  %v471_v6 = vpop.permute.xlu0 %470 }
 0x134   : > { %v660_v11 = vadd.f32 %v659_v8, %v436_v7  ;;  %v661_v12 = vpop.f32.mrb[7].mxu0  ;;  %948 = vmatprep.subr.bf16.mxu1 %v773_v9  ;;  %v476_v8 = vpop.permute.xlu1 %475 }
 0x135   : > { %v662_v15 = vadd.f32 %v661_v12, %v436_v7  ;;  %949 = vmatpush1.bf16.msra.mxu1 %v772_v13 }
 0x136   : > { %v726_v16 = vpack.c.bf16 %v660_v11, %v656_v10 }
 0x137   : > { %v727_v17 = vpack.c.bf16 %v662_v15, %v658_v14 }
 0x138   : > { %v758_v18 = vmul.bf16 1045249613, %v726_v16  ;;  %vm742_vm4 = vcmp.gt.bf16.partialorder %v726_v16, 0 }
 0x139   : > { %v665_v19 = vpop.f32.mrb[8].mxu0  ;;  %vm743_vm3 = vcmp.gt.bf16.partialorder %v727_v17, 0  ;;  %v759_v20 = vmul.bf16 1045249613, %v727_v17 }
 0x13a   : > { %v667_v22 = vpop.f32.mrb[9].mxu0  ;;  %v666_v26 = vadd.f32 %v665_v19, %v441_v21  ;;  %v774_v29 = vsel %vm742_vm4, %v726_v16, %v758_v18 }
 0x13b   : > { %v669_v24 = vpop.f32.mrb[10].mxu0  ;;  %v775_v25 = vsel %vm743_vm3, %v727_v17, %v759_v20  ;;  %v668_v30 = vadd.f32 %v667_v22, %v441_v21  ;;  %v481_v22 = vpop.permute.xlu0 %480 }
 0x13c   : > { %v670_v27 = vadd.f32 %v669_v24, %v446_v23  ;;  %v671_v28 = vpop.f32.mrb[11].mxu0  ;;  %950 = vmatprep.subr.bf16.mxu1 %v775_v25  ;;  %v486_v24 = vpop.permute.xlu1 %485 }
 0x13d   : > { %v672_v31 = vadd.f32 %v671_v28, %v446_v23  ;;  %951 = vmatpush1.bf16.msra.mxu1 %v774_v29 }
 0x13e   : > { %v728_v32 = vpack.c.bf16 %v670_v27, %v666_v26 }
 0x13f   : > { %v729_v33 = vpack.c.bf16 %v672_v31, %v668_v30 }
 0x140   : > { %v760_v34 = vmul.bf16 1045249613, %v728_v32  ;;  %vm744_vm6 = vcmp.gt.bf16.partialorder %v728_v32, 0 }
 0x141   : > { %v675_v35 = vpop.f32.mrb[12].mxu0  ;;  %vm745_vm5 = vcmp.gt.bf16.partialorder %v729_v33, 0  ;;  %v761_v36 = vmul.bf16 1045249613, %v729_v33 }
 0x142   : > { %v677_v1 = vpop.f32.mrb[13].mxu0  ;;  %v676_v41 = vadd.f32 %v675_v35, %v451_v37  ;;  %v776_v44 = vsel %vm744_vm6, %v728_v32, %v760_v34 }
 0x143   : > { %v679_v39 = vpop.f32.mrb[14].mxu0  ;;  %v777_v40 = vsel %vm745_vm5, %v729_v33, %v761_v36  ;;  %v678_v45 = vadd.f32 %v677_v1, %v451_v37  ;;  %v491_v1 = vpop.permute.xlu0 %490 }
 0x144   : > { %v680_v42 = vadd.f32 %v679_v39, %v456_v38  ;;  %v681_v43 = vpop.f32.mrb[15].mxu0  ;;  %952 = vmatprep.subr.bf16.mxu1 %v777_v40  ;;  %v496_v39 = vpop.permute.xlu1 %495 }
 0x145   : > { %v682_v46 = vadd.f32 %v681_v43, %v456_v38  ;;  %953 = vmatpush1.bf16.msra.mxu1 %v776_v44 }
 0x146   : > { %v730_v47 = vpack.c.bf16 %v680_v42, %v676_v41 }
 0x147   : > { %v731_v48 = vpack.c.bf16 %v682_v46, %v678_v45 }
 0x148   : > { %v762_v49 = vmul.bf16 1045249613, %v730_v47  ;;  %vm746_vm8 = vcmp.gt.bf16.partialorder %v730_v47, 0 }
 0x149   : > { %v685_v50 = vpop.f32.mrb[16].mxu0  ;;  %vm747_vm7 = vcmp.gt.bf16.partialorder %v731_v48, 0  ;;  %v763_v51 = vmul.bf16 1045249613, %v731_v48 }
 0x14a   : > { %v687_v53 = vpop.f32.mrb[17].mxu0  ;;  %v686_v57 = vadd.f32 %v685_v50, %v461_v52  ;;  %v778_v60 = vsel %vm746_vm8, %v730_v47, %v762_v49 }
 0x14b   : > { %v689_v55 = vpop.f32.mrb[18].mxu0  ;;  %v779_v56 = vsel %vm747_vm7, %v731_v48, %v763_v51  ;;  %v688_v61 = vadd.f32 %v687_v53, %v461_v52 }
 0x14c   : > { %v690_v58 = vadd.f32 %v689_v55, %v466_v54  ;;  %v691_v59 = vpop.f32.mrb[19].mxu0  ;;  %954 = vmatprep.subr.bf16.mxu1 %v779_v56  ;;  %v1704_v55 = vld [vmem:[%s2122_s3 + $0x8] sm:$0xff]   ;;  %v1705_v56 = vld [vmem:[%s2122_s3 + $0x10] sm:$0xff]  }
 0x14d   : > { %v692_v62 = vadd.f32 %v691_v59, %v466_v54  ;;  %955 = vmatpush1.bf16.msra.mxu1 %v778_v60  ;;  %v1703_v54 = vld [vmem:[%s2122_s3] sm:$0xff]   ;;  %v1708_v59 = vld [vmem:[%s2122_s3 + $0x28] sm:$0xff]   ;;  %v1709_v60 = vld [vmem:[%s2122_s3 + $0x30] sm:$0xff]  }
 0x14e   : > { %v732_v63 = vpack.c.bf16 %v690_v58, %v686_v57  ;;  %v1706_v57 = vld [vmem:[%s2122_s3 + $0x18] sm:$0xff]   ;;  %v1707_v58 = vld [vmem:[%s2122_s3 + $0x20] sm:$0xff]  }
 0x14f   : > { %v733_v0 = vpack.c.bf16 %v692_v62, %v688_v61  ;;  %v1710_v61 = vld [vmem:[%s2122_s3 + $0x38] sm:$0xff]  }
 0x150   : > { %v764_v2 = vmul.bf16 1045249613, %v732_v63  ;;  %vm748_vm10 = vcmp.gt.bf16.partialorder %v732_v63, 0 }
 0x151   : > { %v695_v4 = vpop.f32.mrb[20].mxu0  ;;  %vm749_vm9 = vcmp.gt.bf16.partialorder %v733_v0, 0  ;;  %v765_v5 = vmul.bf16 1045249613, %v733_v0 }
 0x152   : > { %v697_v7 = vpop.f32.mrb[21].mxu0  ;;  %v696_v11 = vadd.f32 %v695_v4, %v471_v6  ;;  %v780_v14 = vsel %vm748_vm10, %v732_v63, %v764_v2  ;;  %v823_v63 = vpop.permute.xlu0 %822 }
 0x153   : > { %v699_v9 = vpop.f32.mrb[22].mxu0  ;;  %v781_v10 = vsel %vm749_vm9, %v733_v0, %v765_v5  ;;  %v698_v15 = vadd.f32 %v697_v7, %v471_v6  ;;  %v828_v2 = vpop.permute.xlu1 %827 }
 0x154   : > { %v700_v12 = vadd.f32 %v699_v9, %v476_v8  ;;  %v701_v13 = vpop.f32.mrb[23].mxu0  ;;  %956 = vmatprep.subr.bf16.mxu1 %v781_v10 }
 0x155   : > { %v702_v16 = vadd.f32 %v701_v13, %v476_v8  ;;  %957 = vmatpush1.bf16.msra.mxu1 %v780_v14 }
 0x156   : > { %v734_v17 = vpack.c.bf16 %v700_v12, %v696_v11 }
 0x157   : > { %v735_v18 = vpack.c.bf16 %v702_v16, %v698_v15  ;;  %v833_v15 = vpop.permute.xlu0 %832 }
 0x158   : > { %v766_v19 = vmul.bf16 1045249613, %v734_v17  ;;  %vm750_vm12 = vcmp.gt.bf16.partialorder %v734_v17, 0 }
 0x159   : > { %v705_v20 = vpop.f32.mrb[24].mxu0  ;;  %vm751_vm11 = vcmp.gt.bf16.partialorder %v735_v18, 0  ;;  %v767_v21 = vmul.bf16 1045249613, %v735_v18 }
 0x15a   : > { %v707_v23 = vpop.f32.mrb[25].mxu0  ;;  %v706_v27 = vadd.f32 %v705_v20, %v481_v22  ;;  %v782_v30 = vsel %vm750_vm12, %v734_v17, %v766_v19  ;;  %v838_v17 = vpop.permute.xlu1 %837 }
 0x15b   : > { %v709_v25 = vpop.f32.mrb[26].mxu0  ;;  %v783_v26 = vsel %vm751_vm11, %v735_v18, %v767_v21  ;;  %v708_v31 = vadd.f32 %v707_v23, %v481_v22 }
 0x15c   : > { %v710_v28 = vadd.f32 %v709_v25, %v486_v24  ;;  %v711_v29 = vpop.f32.mrb[27].mxu0  ;;  %958 = vmatprep.subr.bf16.mxu1 %v783_v26 }
 0x15d   : > { %v712_v32 = vadd.f32 %v711_v29, %v486_v24  ;;  %959 = vmatpush1.bf16.msra.mxu1 %v782_v30 }
 0x15e   : > { %v736_v33 = vpack.c.bf16 %v710_v28, %v706_v27 }
 0x15f   : > { %v737_v34 = vpack.c.bf16 %v712_v32, %v708_v31  ;;  %v843_v31 = vpop.permute.xlu0 %842 }
 0x160   : > { %v768_v35 = vmul.bf16 1045249613, %v736_v33  ;;  %vm752_vm14 = vcmp.gt.bf16.partialorder %v736_v33, 0 }
 0x161   : > { %v715_v36 = vpop.f32.mrb[28].mxu0  ;;  %vm753_vm13 = vcmp.gt.bf16.partialorder %v737_v34, 0  ;;  %v769_v37 = vmul.bf16 1045249613, %v737_v34 }
 0x162   : > { %v717_v38 = vpop.f32.mrb[29].mxu0  ;;  %v716_v42 = vadd.f32 %v715_v36, %v491_v1  ;;  %v784_v45 = vsel %vm752_vm14, %v736_v33, %v768_v35  ;;  %v848_v33 = vpop.permute.xlu1 %847 }
 0x163   : > { %v719_v40 = vpop.f32.mrb[30].mxu0  ;;  %v785_v41 = vsel %vm753_vm13, %v737_v34, %v769_v37  ;;  %v718_v46 = vadd.f32 %v717_v38, %v491_v1 }
 0x164   : > { %v720_v43 = vadd.f32 %v719_v40, %v496_v39  ;;  %v721_v44 = vpop.f32.mrb[31].mxu0  ;;  %960 = vmatprep.subr.bf16.mxu1 %v785_v41 }
 0x165   : > { %v722_v47 = vadd.f32 %v721_v44, %v496_v39  ;;  %961 = vmatpush1.bf16.msra.mxu1 %v784_v45 }
 0x166   : > { %v738_v48 = vpack.c.bf16 %v720_v43, %v716_v42 }
 0x167   : > { %v739_v49 = vpack.c.bf16 %v722_v47, %v718_v46  ;;  %v853_v46 = vpop.permute.xlu0 %852 }
 0x168   : > { %v770_v50 = vmul.bf16 1045249613, %v738_v48  ;;  %vm754_vm0 = vcmp.gt.bf16.partialorder %v738_v48, 0 }
 0x169   : > { %vm755_vm15 = vcmp.gt.bf16.partialorder %v739_v49, 0  ;;  %v771_v51 = vmul.bf16 1045249613, %v739_v49 }
 0x16a   : > { %v786_v53 = vsel %vm754_vm0, %v738_v48, %v770_v50  ;;  %v858_v48 = vpop.permute.xlu1 %857 }
 0x16b   : > { %v787_v52 = vsel %vm755_vm15, %v739_v49, %v771_v51 }
 0x16c   : > { %962 = vmatprep.subr.bf16.mxu1 %v787_v52 }
 0x16d   : > { %963 = vmatpush1.bf16.msra.mxu1 %v786_v53 }
 0x170   : > { %981 = vmatmul.mubr.bf16.vlgmr.msra.gmra.mrb[0].mxu1 %v1703_v54 }
 0x171   : > { %990 = vmatprep.mubr.bf16.mxu1 %v1735_v3 }
 0x178   : > { %991 = vmatmul.mubr.bf16.gmra.mrb[4].mxu1 %v1704_v55 }
 0x179   : > { %1000 = vmatprep.mubr.bf16.mxu1 %v1735_v3 }
 0x180   : > { %1001 = vmatmul.mubr.bf16.gmra.mrb[8].mxu1 %v1705_v56 }
 0x181   : > { %1010 = vmatprep.mubr.bf16.mxu1 %v1735_v3 }
 0x188   : > { %1011 = vmatmul.mubr.bf16.gmra.mrb[12].mxu1 %v1706_v57 }
 0x189   : > { %1020 = vmatprep.mubr.bf16.mxu1 %v1735_v3 }
 0x190   : > { %1021 = vmatmul.mubr.bf16.gmra.mrb[16].mxu1 %v1707_v58 }
 0x191   : > { %1030 = vmatprep.mubr.bf16.mxu1 %v1735_v3 }
 0x198   : > { %1031 = vmatmul.mubr.bf16.gmra.mrb[20].mxu1 %v1708_v59 }
 0x199   : > { %1040 = vmatprep.mubr.bf16.mxu1 %v1735_v3 }
 0x1a0   : > { %1041 = vmatmul.mubr.bf16.gmra.mrb[24].mxu1 %v1709_v60 }
 0x1a1   : > { %1050 = vmatprep.mubr.bf16.mxu1 %v1735_v3 }
 0x1a8   : > { %1051 = vmatmul.mubr.bf16.gmra.mrb[28].mxu1 %v1710_v61 }
 0x1a9   : > { %1317 = vmatprep.mubr.bf16.mxu1 %v1735_v3 }
 0x243   : > { %v982_v62 = vpop.f32.mrb[0].mxu1 }
 0x244   : > { %v984_v0 = vpop.f32.mrb[1].mxu1  ;;  %v983_v5 = vadd.f32 %v982_v62, %v823_v63  ;;  %v863_v62 = vpop.permute.xlu0 %862 }
 0x245   : > { %v986_v4 = vpop.f32.mrb[2].mxu1  ;;  %v985_v8 = vadd.f32 %v984_v0, %v823_v63  ;;  %v868_v0 = vpop.permute.xlu1 %867 }
 0x246   : > { %v987_v6 = vadd.f32 %v986_v4, %v828_v2  ;;  %v988_v7 = vpop.f32.mrb[3].mxu1 }
 0x247   : > { %v989_v9 = vadd.f32 %v988_v7, %v828_v2 }
 0x248   : > { %v1061_v10 = vpack.c.bf16 %v987_v6, %v983_v5 }
 0x249   : > { %v1062_v11 = vpack.c.bf16 %v989_v9, %v985_v8 }
 0x24a   : > { %v1093_v12 = vmul.bf16 1045249613, %v1061_v10  ;;  %vm1077_vm2 = vcmp.gt.bf16.partialorder %v1061_v10, 0 }
 0x24b   : > { %v992_v13 = vpop.f32.mrb[4].mxu1  ;;  %vm1078_vm1 = vcmp.gt.bf16.partialorder %v1062_v11, 0  ;;  %v1094_v14 = vmul.bf16 1045249613, %v1062_v11 }
 0x24c   : > { %v994_v16 = vpop.f32.mrb[5].mxu1  ;;  %v993_v20 = vadd.f32 %v992_v13, %v833_v15  ;;  %v1109_v23 = vsel %vm1077_vm2, %v1061_v10, %v1093_v12 }
 0x24d   : > { %v996_v18 = vpop.f32.mrb[6].mxu1  ;;  %v1110_v19 = vsel %vm1078_vm1, %v1062_v11, %v1094_v14  ;;  %v995_v24 = vadd.f32 %v994_v16, %v833_v15  ;;  %v873_v16 = vpop.permute.xlu0 %872 }
 0x24e   : > { %v997_v21 = vadd.f32 %v996_v18, %v838_v17  ;;  %v998_v22 = vpop.f32.mrb[7].mxu1  ;;  %1285 = vmatprep.subr.bf16.mxu1 %v1110_v19  ;;  %v878_v18 = vpop.permute.xlu1 %877 }
 0x24f   : > { %v999_v25 = vadd.f32 %v998_v22, %v838_v17  ;;  %1286 = vmatpush1.bf16.msra.mxu1 %v1109_v23 }
 0x250   : > { %v1063_v26 = vpack.c.bf16 %v997_v21, %v993_v20 }
 0x251   : > { %v1064_v27 = vpack.c.bf16 %v999_v25, %v995_v24 }
 0x252   : > { %v1095_v28 = vmul.bf16 1045249613, %v1063_v26  ;;  %vm1079_vm4 = vcmp.gt.bf16.partialorder %v1063_v26, 0 }
 0x253   : > { %v1002_v29 = vpop.f32.mrb[8].mxu1  ;;  %vm1080_vm3 = vcmp.gt.bf16.partialorder %v1064_v27, 0  ;;  %v1096_v30 = vmul.bf16 1045249613, %v1064_v27 }
 0x254   : > { %v1004_v32 = vpop.f32.mrb[9].mxu1  ;;  %v1003_v36 = vadd.f32 %v1002_v29, %v843_v31  ;;  %v1111_v38 = vsel %vm1079_vm4, %v1063_v26, %v1095_v28 }
 0x255   : > { %v1006_v34 = vpop.f32.mrb[10].mxu1  ;;  %v1112_v35 = vsel %vm1080_vm3, %v1064_v27, %v1096_v30  ;;  %v1005_v39 = vadd.f32 %v1004_v32, %v843_v31  ;;  %v883_v32 = vpop.permute.xlu0 %882 }
 0x256   : > { %v1007_v37 = vadd.f32 %v1006_v34, %v848_v33  ;;  %v1008_v1 = vpop.f32.mrb[11].mxu1  ;;  %1287 = vmatprep.subr.bf16.mxu1 %v1112_v35  ;;  %v888_v34 = vpop.permute.xlu1 %887 }
 0x257   : > { %v1009_v40 = vadd.f32 %v1008_v1, %v848_v33  ;;  %1288 = vmatpush1.bf16.msra.mxu1 %v1111_v38 }
 0x258   : > { %v1065_v41 = vpack.c.bf16 %v1007_v37, %v1003_v36 }
 0x259   : > { %v1066_v42 = vpack.c.bf16 %v1009_v40, %v1005_v39 }
 0x25a   : > { %v1097_v43 = vmul.bf16 1045249613, %v1065_v41  ;;  %vm1081_vm6 = vcmp.gt.bf16.partialorder %v1065_v41, 0 }
 0x25b   : > { %v1012_v44 = vpop.f32.mrb[12].mxu1  ;;  %vm1082_vm5 = vcmp.gt.bf16.partialorder %v1066_v42, 0  ;;  %v1098_v45 = vmul.bf16 1045249613, %v1066_v42 }
 0x25c   : > { %v1014_v47 = vpop.f32.mrb[13].mxu1  ;;  %v1013_v51 = vadd.f32 %v1012_v44, %v853_v46  ;;  %v1113_v54 = vsel %vm1081_vm6, %v1065_v41, %v1097_v43 }
 0x25d   : > { %v1016_v49 = vpop.f32.mrb[14].mxu1  ;;  %v1114_v50 = vsel %vm1082_vm5, %v1066_v42, %v1098_v45  ;;  %v1015_v55 = vadd.f32 %v1014_v47, %v853_v46  ;;  %v893_v47 = vpop.permute.xlu0 %892 }
 0x25e   : > { %v1017_v52 = vadd.f32 %v1016_v49, %v858_v48  ;;  %v1018_v53 = vpop.f32.mrb[15].mxu1  ;;  %1289 = vmatprep.subr.bf16.mxu1 %v1114_v50  ;;  %v898_v49 = vpop.permute.xlu1 %897 }
 0x25f   : > { %v1019_v56 = vadd.f32 %v1018_v53, %v858_v48  ;;  %1290 = vmatpush1.bf16.msra.mxu1 %v1113_v54 }
 0x260   : > { %v1067_v57 = vpack.c.bf16 %v1017_v52, %v1013_v51 }
 0x261   : > { %v1068_v58 = vpack.c.bf16 %v1019_v56, %v1015_v55 }
 0x262   : > { %v1099_v59 = vmul.bf16 1045249613, %v1067_v57  ;;  %vm1083_vm8 = vcmp.gt.bf16.partialorder %v1067_v57, 0 }
 0x263   : > { %v1022_v60 = vpop.f32.mrb[16].mxu1  ;;  %vm1084_vm7 = vcmp.gt.bf16.partialorder %v1068_v58, 0  ;;  %v1100_v61 = vmul.bf16 1045249613, %v1068_v58 }
 0x264   : > { %v1024_v63 = vpop.f32.mrb[17].mxu1  ;;  %v1023_v5 = vadd.f32 %v1022_v60, %v863_v62  ;;  %v1115_v8 = vsel %vm1083_vm8, %v1067_v57, %v1099_v59 }
 0x265   : > { %v1026_v2 = vpop.f32.mrb[18].mxu1  ;;  %v1116_v4 = vsel %vm1084_vm7, %v1068_v58, %v1100_v61  ;;  %v1025_v9 = vadd.f32 %v1024_v63, %v863_v62 }
 0x266   : > { %v1027_v6 = vadd.f32 %v1026_v2, %v868_v0  ;;  %v1028_v7 = vpop.f32.mrb[19].mxu1  ;;  %1291 = vmatprep.subr.bf16.mxu1 %v1116_v4  ;;  %v1712_v2 = vld [vmem:[%s2124_s5 + $0x8] sm:$0xff]   ;;  %v1713_v4 = vld [vmem:[%s2124_s5 + $0x10] sm:$0xff]  }
 0x267   : > { %v1029_v10 = vadd.f32 %v1028_v7, %v868_v0  ;;  %1292 = vmatpush1.bf16.msra.mxu1 %v1115_v8  ;;  %v1711_v0 = vld [vmem:[%s2124_s5] sm:$0xff]   ;;  %v1716_v7 = vld [vmem:[%s2124_s5 + $0x28] sm:$0xff]   ;;  %v1717_v8 = vld [vmem:[%s2124_s5 + $0x30] sm:$0xff]  }
 0x268   : > { %v1069_v11 = vpack.c.bf16 %v1027_v6, %v1023_v5  ;;  %v1714_v5 = vld [vmem:[%s2124_s5 + $0x18] sm:$0xff]   ;;  %v1715_v6 = vld [vmem:[%s2124_s5 + $0x20] sm:$0xff]  }
 0x269   : > { %v1070_v12 = vpack.c.bf16 %v1029_v10, %v1025_v9  ;;  %v1718_v9 = vld [vmem:[%s2124_s5 + $0x38] sm:$0xff]  }
 0x26a   : > { %v1101_v13 = vmul.bf16 1045249613, %v1069_v11  ;;  %vm1085_vm10 = vcmp.gt.bf16.partialorder %v1069_v11, 0 }
 0x26b   : > { %v1032_v14 = vpop.f32.mrb[20].mxu1  ;;  %vm1086_vm9 = vcmp.gt.bf16.partialorder %v1070_v12, 0  ;;  %v1102_v15 = vmul.bf16 1045249613, %v1070_v12 }
 0x26c   : > { %v1034_v17 = vpop.f32.mrb[21].mxu1  ;;  %v1033_v21 = vadd.f32 %v1032_v14, %v873_v16  ;;  %v1117_v24 = vsel %vm1085_vm10, %v1069_v11, %v1101_v13  ;;  %v1160_v11 = vpop.permute.xlu0 %1159 }
 0x26d   : > { %v1036_v19 = vpop.f32.mrb[22].mxu1  ;;  %v1118_v20 = vsel %vm1086_vm9, %v1070_v12, %v1102_v15  ;;  %v1035_v25 = vadd.f32 %v1034_v17, %v873_v16  ;;  %v1165_v13 = vpop.permute.xlu1 %1164 }
 0x26e   : > { %v1037_v22 = vadd.f32 %v1036_v19, %v878_v18  ;;  %v1038_v23 = vpop.f32.mrb[23].mxu1  ;;  %1293 = vmatprep.subr.bf16.mxu1 %v1118_v20 }
 0x26f   : > { %v1039_v26 = vadd.f32 %v1038_v23, %v878_v18  ;;  %1294 = vmatpush1.bf16.msra.mxu1 %v1117_v24 }
 0x270   : > { %v1071_v27 = vpack.c.bf16 %v1037_v22, %v1033_v21  ;;  %v1170_v24 = vpop.permute.xlu0 %1169 }
 0x271   : > { %v1072_v28 = vpack.c.bf16 %v1039_v26, %v1035_v25  ;;  %v1175_v26 = vpop.permute.xlu1 %1174 }
 0x272   : > { %v1103_v29 = vmul.bf16 1045249613, %v1071_v27  ;;  %vm1087_vm12 = vcmp.gt.bf16.partialorder %v1071_v27, 0 }
 0x273   : > { %v1042_v30 = vpop.f32.mrb[24].mxu1  ;;  %vm1088_vm11 = vcmp.gt.bf16.partialorder %v1072_v28, 0  ;;  %v1104_v31 = vmul.bf16 1045249613, %v1072_v28 }
 0x274   : > { %v1044_v33 = vpop.f32.mrb[25].mxu1  ;;  %v1043_v37 = vadd.f32 %v1042_v30, %v883_v32  ;;  %v1119_v39 = vsel %vm1087_vm12, %v1071_v27, %v1103_v29 }
 0x275   : > { %v1046_v35 = vpop.f32.mrb[26].mxu1  ;;  %v1120_v36 = vsel %vm1088_vm11, %v1072_v28, %v1104_v31  ;;  %v1045_v40 = vadd.f32 %v1044_v33, %v883_v32 }
 0x276   : > { %v1047_v1 = vadd.f32 %v1046_v35, %v888_v34  ;;  %v1048_v38 = vpop.f32.mrb[27].mxu1  ;;  %1295 = vmatprep.subr.bf16.mxu1 %v1120_v36 }
 0x277   : > { %v1049_v41 = vadd.f32 %v1048_v38, %v888_v34  ;;  %1296 = vmatpush1.bf16.msra.mxu1 %v1119_v39  ;;  %v1180_v39 = vpop.permute.xlu0 %1179 }
 0x278   : > { %v1073_v42 = vpack.c.bf16 %v1047_v1, %v1043_v37 }
 0x279   : > { %v1074_v43 = vpack.c.bf16 %v1049_v41, %v1045_v40  ;;  %v1185_v41 = vpop.permute.xlu1 %1184 }
 0x27a   : > { %v1105_v44 = vmul.bf16 1045249613, %v1073_v42  ;;  %vm1089_vm14 = vcmp.gt.bf16.partialorder %v1073_v42, 0 }
 0x27b   : > { %v1052_v45 = vpop.f32.mrb[28].mxu1  ;;  %vm1090_vm13 = vcmp.gt.bf16.partialorder %v1074_v43, 0  ;;  %v1106_v46 = vmul.bf16 1045249613, %v1074_v43 }
 0x27c   : > { %v1054_v48 = vpop.f32.mrb[29].mxu1  ;;  %v1053_v52 = vadd.f32 %v1052_v45, %v893_v47  ;;  %v1121_v55 = vsel %vm1089_vm14, %v1073_v42, %v1105_v44 }
 0x27d   : > { %v1056_v50 = vpop.f32.mrb[30].mxu1  ;;  %v1122_v51 = vsel %vm1090_vm13, %v1074_v43, %v1106_v46  ;;  %v1055_v56 = vadd.f32 %v1054_v48, %v893_v47 }
 0x27e   : > { %v1057_v53 = vadd.f32 %v1056_v50, %v898_v49  ;;  %v1058_v54 = vpop.f32.mrb[31].mxu1  ;;  %1297 = vmatprep.subr.bf16.mxu1 %v1122_v51 }
 0x27f   : > { %v1059_v57 = vadd.f32 %v1058_v54, %v898_v49  ;;  %1298 = vmatpush1.bf16.msra.mxu1 %v1121_v55  ;;  %v1190_v55 = vpop.permute.xlu0 %1189 }
 0x280   : > { %v1075_v58 = vpack.c.bf16 %v1057_v53, %v1053_v52 }
 0x281   : > { %v1076_v59 = vpack.c.bf16 %v1059_v57, %v1055_v56  ;;  %v1195_v57 = vpop.permute.xlu1 %1194 }
 0x282   : > { %v1107_v60 = vmul.bf16 1045249613, %v1075_v58  ;;  %vm1091_vm0 = vcmp.gt.bf16.partialorder %v1075_v58, 0 }
 0x283   : > { %vm1092_vm15 = vcmp.gt.bf16.partialorder %v1076_v59, 0  ;;  %v1108_v61 = vmul.bf16 1045249613, %v1076_v59 }
 0x284   : > { %v1123_v63 = vsel %vm1091_vm0, %v1075_v58, %v1107_v60 }
 0x285   : > { %v1124_v62 = vsel %vm1092_vm15, %v1076_v59, %v1108_v61 }
 0x286   : > { %1299 = vmatprep.subr.bf16.mxu1 %v1124_v62 }
 0x287   : > { %1300 = vmatpush1.bf16.msra.mxu1 %v1123_v63 }
 0x28a   : > { %1318 = vmatmul.mubr.bf16.vlgmr.msra.gmra.mrb[32].mxu1 %v1711_v0 }
 0x28b   : > { %1327 = vmatprep.mubr.bf16.mxu1 %v1735_v3 }
 0x292   : > { %1328 = vmatmul.mubr.bf16.gmra.mrb[36].mxu1 %v1712_v2 }
 0x293   : > { %1337 = vmatprep.mubr.bf16.mxu1 %v1735_v3 }
 0x29a   : > { %1338 = vmatmul.mubr.bf16.gmra.mrb[40].mxu1 %v1713_v4 }
 0x29b   : > { %1347 = vmatprep.mubr.bf16.mxu1 %v1735_v3 }
 0x2a2   : > { %1348 = vmatmul.mubr.bf16.gmra.mrb[44].mxu1 %v1714_v5 }
 0x2a3   : > { %1357 = vmatprep.mubr.bf16.mxu1 %v1735_v3 }
 0x2aa   : > { %1358 = vmatmul.mubr.bf16.gmra.mrb[48].mxu1 %v1715_v6 }
 0x2ab   : > { %1367 = vmatprep.mubr.bf16.mxu1 %v1735_v3 }
 0x2b2   : > { %1368 = vmatmul.mubr.bf16.gmra.mrb[52].mxu1 %v1716_v7 }
 0x2b3   : > { %1377 = vmatprep.mubr.bf16.mxu1 %v1735_v3 }
 0x2ba   : > { %1378 = vmatmul.mubr.bf16.gmra.mrb[56].mxu1 %v1717_v8 }
 0x2bb   : > { %1387 = vmatprep.mubr.bf16.mxu1 %v1735_v3 }
 0x2c2   : > { %1388 = vmatmul.mubr.bf16.gmra.mrb[60].mxu1 %v1718_v9  ;;  %v1200_v9 = vpop.permute.xlu0 %1199 }
 0x35d   : > { %v1319_v10 = vpop.f32.mrb[32].mxu1 }
 0x35e   : > { %v1321_v12 = vpop.f32.mrb[33].mxu1  ;;  %v1320_v15 = vadd.f32 %v1319_v10, %v1160_v11 }
 0x35f   : > { %v1323_v14 = vpop.f32.mrb[34].mxu1  ;;  %v1322_v18 = vadd.f32 %v1321_v12, %v1160_v11  ;;  %v1205_v11 = vpop.permute.xlu1 %1204 }
 0x360   : > { %v1324_v16 = vadd.f32 %v1323_v14, %v1165_v13  ;;  %v1325_v17 = vpop.f32.mrb[35].mxu1 }
 0x361   : > { %v1326_v19 = vadd.f32 %v1325_v17, %v1165_v13 }
 0x362   : > { %v1398_v20 = vpack.c.bf16 %v1324_v16, %v1320_v15 }
 0x363   : > { %v1399_v21 = vpack.c.bf16 %v1326_v19, %v1322_v18 }
 0x364   : > { %v1430_v22 = vmul.bf16 1045249613, %v1398_v20  ;;  %vm1414_vm2 = vcmp.gt.bf16.partialorder %v1398_v20, 0 }
 0x365   : > { %v1329_v23 = vpop.f32.mrb[36].mxu1  ;;  %vm1415_vm1 = vcmp.gt.bf16.partialorder %v1399_v21, 0  ;;  %v1431_v3 = vmul.bf16 1045249613, %v1399_v21 }
 0x366   : > { %v1331_v25 = vpop.f32.mrb[37].mxu1  ;;  %v1330_v29 = vadd.f32 %v1329_v23, %v1170_v24  ;;  %v1446_v32 = vsel %vm1414_vm2, %v1398_v20, %v1430_v22 }
 0x367   : > { %v1333_v27 = vpop.f32.mrb[38].mxu1  ;;  %v1447_v28 = vsel %vm1415_vm1, %v1399_v21, %v1431_v3  ;;  %v1332_v33 = vadd.f32 %v1331_v25, %v1170_v24  ;;  %v1210_v24 = vpop.permute.xlu0 %1209 }
 0x368   : > { %v1334_v30 = vadd.f32 %v1333_v27, %v1175_v26  ;;  %v1335_v31 = vpop.f32.mrb[39].mxu1  ;;  %1473 = vmatprep.subr.bf16.mxu0 %v1447_v28 }
 0x369   : > { %v1336_v34 = vadd.f32 %v1335_v31, %v1175_v26  ;;  %1474 = vmatpush1.bf16.msra.mxu0 %v1446_v32  ;;  %v1215_v26 = vpop.permute.xlu1 %1214 }
 0x36a   : > { %v1400_v35 = vpack.c.bf16 %v1334_v30, %v1330_v29 }
 0x36b   : > { %v1401_v36 = vpack.c.bf16 %v1336_v34, %v1332_v33 }
 0x36c   : > { %v1432_v37 = vmul.bf16 1045249613, %v1400_v35  ;;  %vm1416_vm4 = vcmp.gt.bf16.partialorder %v1400_v35, 0 }
 0x36d   : > { %v1339_v1 = vpop.f32.mrb[40].mxu1  ;;  %vm1417_vm3 = vcmp.gt.bf16.partialorder %v1401_v36, 0  ;;  %v1433_v38 = vmul.bf16 1045249613, %v1401_v36 }
 0x36e   : > { %v1341_v40 = vpop.f32.mrb[41].mxu1  ;;  %v1340_v44 = vadd.f32 %v1339_v1, %v1180_v39  ;;  %v1448_v47 = vsel %vm1416_vm4, %v1400_v35, %v1432_v37 }
 0x36f   : > { %v1343_v42 = vpop.f32.mrb[42].mxu1  ;;  %v1449_v43 = vsel %vm1417_vm3, %v1401_v36, %v1433_v38  ;;  %v1342_v48 = vadd.f32 %v1341_v40, %v1180_v39  ;;  %v1220_v39 = vpop.permute.xlu0 %1219 }
 0x370   : > { %v1344_v45 = vadd.f32 %v1343_v42, %v1185_v41  ;;  %v1345_v46 = vpop.f32.mrb[43].mxu1  ;;  %1475 = vmatprep.subr.bf16.mxu0 %v1449_v43 }
 0x371   : > { %v1346_v49 = vadd.f32 %v1345_v46, %v1185_v41  ;;  %1476 = vmatpush1.bf16.msra.mxu0 %v1448_v47  ;;  %v1225_v41 = vpop.permute.xlu1 %1224 }
 0x372   : > { %v1402_v50 = vpack.c.bf16 %v1344_v45, %v1340_v44 }
 0x373   : > { %v1403_v51 = vpack.c.bf16 %v1346_v49, %v1342_v48 }
 0x374   : > { %v1434_v52 = vmul.bf16 1045249613, %v1402_v50  ;;  %vm1418_vm6 = vcmp.gt.bf16.partialorder %v1402_v50, 0 }
 0x375   : > { %v1349_v53 = vpop.f32.mrb[44].mxu1  ;;  %vm1419_vm5 = vcmp.gt.bf16.partialorder %v1403_v51, 0  ;;  %v1435_v54 = vmul.bf16 1045249613, %v1403_v51 }
 0x376   : > { %v1351_v56 = vpop.f32.mrb[45].mxu1  ;;  %v1350_v60 = vadd.f32 %v1349_v53, %v1190_v55  ;;  %v1450_v63 = vsel %vm1418_vm6, %v1402_v50, %v1434_v52 }
 0x377   : > { %v1353_v58 = vpop.f32.mrb[46].mxu1  ;;  %v1451_v59 = vsel %vm1419_vm5, %v1403_v51, %v1435_v54  ;;  %v1352_v0 = vadd.f32 %v1351_v56, %v1190_v55  ;;  %v1230_v55 = vpop.permute.xlu0 %1229 }
 0x378   : > { %v1354_v61 = vadd.f32 %v1353_v58, %v1195_v57  ;;  %v1355_v62 = vpop.f32.mrb[47].mxu1  ;;  %1477 = vmatprep.subr.bf16.mxu0 %v1451_v59 }
 0x379   : > { %v1356_v2 = vadd.f32 %v1355_v62, %v1195_v57  ;;  %1478 = vmatpush1.bf16.msra.mxu0 %v1450_v63  ;;  %v1235_v57 = vpop.permute.xlu1 %1234 }
 0x37a   : > { %v1404_v4 = vpack.c.bf16 %v1354_v61, %v1350_v60 }
 0x37b   : > { %v1405_v5 = vpack.c.bf16 %v1356_v2, %v1352_v0 }
 0x37c   : > { %v1436_v6 = vmul.bf16 1045249613, %v1404_v4  ;;  %vm1420_vm8 = vcmp.gt.bf16.partialorder %v1404_v4, 0 }
 0x37d   : > { %v1359_v7 = vpop.f32.mrb[48].mxu1  ;;  %vm1421_vm7 = vcmp.gt.bf16.partialorder %v1405_v5, 0  ;;  %v1437_v8 = vmul.bf16 1045249613, %v1405_v5 }
 0x37e   : > { %v1361_v10 = vpop.f32.mrb[49].mxu1  ;;  %v1360_v14 = vadd.f32 %v1359_v7, %v1200_v9  ;;  %v1452_v17 = vsel %vm1420_vm8, %v1404_v4, %v1436_v6 }
 0x37f   : > { %v1363_v12 = vpop.f32.mrb[50].mxu1  ;;  %v1453_v13 = vsel %vm1421_vm7, %v1405_v5, %v1437_v8  ;;  %v1362_v18 = vadd.f32 %v1361_v10, %v1200_v9  ;;  %v1462_v10 = vld [vmem:[%s2126_s7] sm:$0x1] }
 0x380   : > { %v1364_v15 = vadd.f32 %v1363_v12, %v1205_v11  ;;  %v1365_v16 = vpop.f32.mrb[51].mxu1  ;;  %1479 = vmatprep.subr.bf16.mxu0 %v1453_v13 }
 0x381   : > { %v1366_v19 = vadd.f32 %v1365_v16, %v1205_v11  ;;  %1480 = vmatpush1.bf16.msra.mxu0 %v1452_v17  ;;  %v1469_v11 = vlaneseq }
 0x382   : > { %v1406_v20 = vpack.c.bf16 %v1364_v15, %v1360_v14  ;;  %v1467_v14 = vpop.permute.xlu0 %1466 }
 0x383   : > { %v1407_v21 = vpack.c.bf16 %v1366_v19, %v1362_v18  ;;  %v1470_v12 = vshrl.u32 %v1469_v11, 7  ;;  %vm1546_vm1 = vcmp.lt.s32.totalorder %v1469_v11, 256 }
 0x384   : > { %v1438_v22 = vmul.bf16 1045249613, %v1406_v20  ;;  %vm1422_vm10 = vcmp.gt.bf16.partialorder %v1406_v20, 0 }
 0x385   : > { %v1369_v23 = vpop.f32.mrb[52].mxu1  ;;  %vm1423_vm9 = vcmp.gt.bf16.partialorder %v1407_v21, 0  ;;  %v1439_v3 = vmul.bf16 1045249613, %v1407_v21  ;;  %v1471_v13 = vsub.s32 0, %v1470_v12 }
 0x386   : > { %v1371_v25 = vpop.f32.mrb[53].mxu1  ;;  %v1370_v29 = vadd.f32 %v1369_v23, %v1210_v24  ;;  %v1454_v32 = vsel %vm1422_vm10, %v1406_v20, %v1438_v22 }
 0x387   : > { %v1373_v27 = vpop.f32.mrb[54].mxu1  ;;  %v1455_v28 = vsel %vm1423_vm9, %v1407_v21, %v1439_v3  ;;  %v1372_v33 = vadd.f32 %v1371_v25, %v1210_v24  ;;  %v1472_v15 = vrot.slane %v1467_v14, %v1471_v13 }
 0x388   : > { %v1374_v30 = vadd.f32 %v1373_v27, %v1215_v26  ;;  %v1375_v31 = vpop.f32.mrb[55].mxu1  ;;  %1481 = vmatprep.subr.bf16.mxu0 %v1455_v28  ;;  %v1736_v27 = vmov 1966171168  }
 0x389   : > { %v1376_v34 = vadd.f32 %v1375_v31, %v1215_v26  ;;  %1482 = vmatpush1.bf16.msra.mxu0 %v1454_v32  ;;  %v1530_v28 = vunpack.c.l.s4 %v1736_v27 }
 0x38a   : > { %v1408_v35 = vpack.c.bf16 %v1374_v30, %v1370_v29 }
 0x38b   : > { %v1409_v36 = vpack.c.bf16 %v1376_v34, %v1372_v33  ;;  %v1531_v29 = vunpack.c.0.s8 %v1530_v28 }
 0x38c   : > { %v1440_v37 = vmul.bf16 1045249613, %v1408_v35  ;;  %vm1424_vm12 = vcmp.gt.bf16.partialorder %v1408_v35, 0 }
 0x38d   : > { %v1379_v1 = vpop.f32.mrb[56].mxu1  ;;  %vm1425_vm11 = vcmp.gt.bf16.partialorder %v1409_v36, 0  ;;  %v1441_v38 = vmul.bf16 1045249613, %v1409_v36  ;;  %v1534_v31 = vsub.s32 %v1531_v29, %v1470_v12 }
 0x38e   : > { %v1381_v40 = vpop.f32.mrb[57].mxu1  ;;  %v1380_v44 = vadd.f32 %v1379_v1, %v1220_v39  ;;  %v1456_v47 = vsel %vm1424_vm12, %v1408_v35, %v1440_v37 }
 0x38f   : > { %v1383_v42 = vpop.f32.mrb[58].mxu1  ;;  %v1457_v43 = vsel %vm1425_vm11, %v1409_v36, %v1441_v38  ;;  %v1382_v48 = vadd.f32 %v1381_v40, %v1220_v39 }
 0x390   : > { %v1384_v45 = vadd.f32 %v1383_v42, %v1225_v41  ;;  %v1385_v46 = vpop.f32.mrb[59].mxu1  ;;  %1483 = vmatprep.subr.bf16.mxu0 %v1457_v43 }
 0x391   : > { %v1386_v49 = vadd.f32 %v1385_v46, %v1225_v41  ;;  %1484 = vmatpush1.bf16.msra.mxu0 %v1456_v47 }
 0x392   : > { %v1410_v50 = vpack.c.bf16 %v1384_v45, %v1380_v44 }
 0x393   : > { %v1411_v51 = vpack.c.bf16 %v1386_v49, %v1382_v48 }
 0x394   : > { %v1442_v52 = vmul.bf16 1045249613, %v1410_v50  ;;  %vm1426_vm14 = vcmp.gt.bf16.partialorder %v1410_v50, 0 }
 0x395   : > { %v1389_v53 = vpop.f32.mrb[60].mxu1  ;;  %vm1427_vm13 = vcmp.gt.bf16.partialorder %v1411_v51, 0  ;;  %v1443_v54 = vmul.bf16 1045249613, %v1411_v51 }
 0x396   : > { %v1391_v56 = vpop.f32.mrb[61].mxu1  ;;  %v1390_v60 = vadd.f32 %v1389_v53, %v1230_v55  ;;  %v1458_v63 = vsel %vm1426_vm14, %v1410_v50, %v1442_v52 }
 0x397   : > { %v1393_v58 = vpop.f32.mrb[62].mxu1  ;;  %v1459_v59 = vsel %vm1427_vm13, %v1411_v51, %v1443_v54  ;;  %v1392_v0 = vadd.f32 %v1391_v56, %v1230_v55 }
 0x398   : > { %v1394_v61 = vadd.f32 %v1393_v58, %v1235_v57  ;;  %v1395_v62 = vpop.f32.mrb[63].mxu1  ;;  %1485 = vmatprep.subr.bf16.mxu0 %v1459_v59 }
 0x399   : > { %v1396_v2 = vadd.f32 %v1395_v62, %v1235_v57  ;;  %1486 = vmatpush1.bf16.msra.mxu0 %v1458_v63 }
 0x39a   : > { %v1412_v4 = vpack.c.bf16 %v1394_v61, %v1390_v60 }
 0x39b   : > { %v1413_v5 = vpack.c.bf16 %v1396_v2, %v1392_v0 }
 0x39c   : > { %v1444_v6 = vmul.bf16 1045249613, %v1412_v4  ;;  %vm1428_vm0 = vcmp.gt.bf16.partialorder %v1412_v4, 0 }
 0x39d   : > { %vm1429_vm15 = vcmp.gt.bf16.partialorder %v1413_v5, 0  ;;  %v1445_v7 = vmul.bf16 1045249613, %v1413_v5 }
 0x39e   : > { %v1460_v9 = vsel %vm1428_vm0, %v1412_v4, %v1444_v6 }
 0x39f   : > { %v1461_v8 = vsel %vm1429_vm15, %v1413_v5, %v1445_v7 }
 0x3a0   : > { %1487 = vmatprep.subr.bf16.mxu0 %v1461_v8 }
 0x3a1   : > { %1488 = vmatpush1.bf16.msra.mxu0 %v1460_v9 }
 0x3a4   : > { %1506 = vmatmul.mubr.bf16.vlgmr.msra.gmra.mrb[32].mxu0 %v1462_v10 }
 0x477   : > { %v1507_v16 = vpop.f32.mrb[32].mxu0 }
 0x478   : > { %v1508_v17 = vadd.f32 %v1507_v16, %v1472_v15  ;;  %v1509_v18 = vpop.f32.mrb[33].mxu0 }
 0x479   : > { %v1510_v19 = vadd.f32 %v1509_v18, %v1472_v15  ;;  %v1511_v20 = vpop.f32.mrb[34].mxu0 }
 0x47a   : > { %v1639_v21 = vmul.f32 -1.442695, %v1508_v17  ;;  %v1512_v22 = vpop.f32.mrb[35].mxu0 }
 0x47b   : > { %v1640_v23 = vmul.f32 -1.442695, %v1510_v19 }
 0x47c   : > { %1719 = vpow2.f32 %v1639_v21 }
 0x47d   : > { %1721 = vpow2.f32 %v1640_v23 }
 0x486   : > { %v1720_v3 = vpop.eup %1719 }
 0x487   : > { %v1722_v24 = vpop.eup %1721  ;;  %v1520_v25 = vadd.f32 1.0, %v1720_v3 }
 0x488   : > { %v1521_v26 = vadd.f32 1.0, %v1722_v24 }
 0x489   : > { %1723 = vrcp.f32 %v1520_v25 }
 0x48a   : > { %1725 = vrcp.f32 %v1521_v26 }
 0x493   : > { %v1724_v30 = vpop.eup %1723 }
 0x494   : > { %v1726_v32 = vpop.eup %1725 }
 0x495   : > { %v1528_v33 = vcombine.low %v1724_v30, %v1726_v32 }
 0x497   : > { %v1535_v34 = vrot.slane %v1528_v33, %v1534_v31 }
 0x499   : > { %v1542_v35 = vrot.slane %v1535_v34, %v1534_v31 }
 0x49b   : > { %1548 = vst.msk [vmem:[%s334_s28] sm:$0x3] %vm1546_vm1, %v1542_v35 }
 0x49c PF: > { %s21_s11 = sadd.s32 1, %s1733_s11  }
 0x49d   : > { %p18_p5 = scmp.ge.s32.totalorder %s21_s11, 4  }
 0x49f   :  { %20 = sbr.rel (!%p18_p5) target bundleno = 3 (0x3), region = 86 }

</bundles_post_ra>
